<compile_context>
chip_gen: v5e
topology: v5e:2x2
jax: 0.10.0
libtpu: 0.0.40
codegen_flags: <defaults>
</compile_context>

<pallas_src>
import jax
import jax.numpy as jnp
from jax.experimental import pallas as pl
from jax.experimental.pallas import tpu as pltpu

# ---- problem constants (fixed by the PyTorch module spec) ----
N_BATCH = 2
C_IN, C_OUT = 3, 2
H_IN, W_IN = 4, 6                    # chosen so C_OUT*(H_IN-2)*(W_IN-2) == 16
KH, KW = 3, 3
H_OUT, W_OUT = H_IN - KH + 1, W_IN - KW + 1      # 2, 4
N_FEAT = C_OUT * H_OUT * W_OUT                   # 16
N_CLS = 8
ROWS_PER_CI = H_IN * N_BATCH                     # 8 rows -> one sublane tile per in-channel


def _fused_forward_kernel(x_ref, convw_ref, convb_ref, fcwt_ref, fcb_ref, out_ref):
    """Fully fused conv+ReLU+flatten+fc+ReLU. Everything resident in VMEM/SMEM."""
    # Hoist all conv scalars once (SMEM scalar reads, shared by every tap/batch item).
    w = [convw_ref[i] for i in range(C_OUT * C_IN * KH * KW)]   # 54 scalars
    cb = [convb_ref[i] for i in range(C_OUT)]

    # ---- conv1, batch-vectorized on the VPU (no MXU padding) ----
    # x_ref rows are ordered (ci, h_in, n): row = ci*8 + h_in*2 + n, so each tap
    # is one static (4, 4) slice (rows = (h_out, n), cols = w_out) that stays
    # inside a single (8,128) tile.  6 independent accumulator chains (co, ci).
    acc = [[jnp.zeros((H_OUT * N_BATCH, W_OUT), jnp.float32) for _ in range(C_IN)]
           for _ in range(C_OUT)]
    for ci in range(C_IN):
        base = ci * ROWS_PER_CI
        for kh in range(KH):
            r0 = base + kh * N_BATCH
            for kw in range(KW):
                patch = x_ref[r0:r0 + H_OUT * N_BATCH, kw:kw + W_OUT]   # (4, 4)
                for co in range(C_OUT):
                    wgt = w[(co * C_IN + ci) * (KH * KW) + kh * KW + kw]
                    acc[co][ci] = acc[co][ci] + wgt * patch

    # bias + ReLU (tree-sum the 3 per-ci partials)
    relu = [jnp.maximum(acc[co][0] + acc[co][1] + acc[co][2] + cb[co], 0.0)
            for co in range(C_OUT)]                                     # (4, 4) each

    # ---- flatten in PyTorch (co, h, w) order -> (N, 16) ----
    # relu[co] rows are (h_out, n); pull the 2-row batch block per (co, h)
    # (static sublane slice) and concatenate along lanes.
    feat = jnp.concatenate(
        [relu[co][h * N_BATCH:(h + 1) * N_BATCH, :]
         for co in range(C_OUT) for h in range(H_OUT)], axis=-1)        # (N, 16)

    # ---- fc1 + ReLU: one (2,16)x(16,8) MXU contraction, one full-block store ----
    out = jnp.dot(feat, fcwt_ref[...], preferred_element_type=jnp.float32) + fcb_ref[...]
    out_ref[...] = jnp.maximum(out, 0.0)


def model_forward(x, params):
    """Forward pass matching the PyTorch Model. x: (N, 3, 4, 6) float32."""
    conv_w, conv_b, fc_w, fc_b = params
    assert x.shape == (N_BATCH, C_IN, H_IN, W_IN)

    # Trace-time prep only: tiny weight reshapes + a 96-element re-layout of x
    # into a 2-D sublane/lane-dense slab with row order (ci, h_in, n).
    x2d = jnp.transpose(x.astype(jnp.float32), (1, 2, 0, 3)).reshape(
        C_IN * H_IN * N_BATCH, W_IN)                                    # (24, 6)
    convw_flat = conv_w.reshape(-1).astype(jnp.float32)                 # (54,) -> SMEM
    convb = conv_b.astype(jnp.float32)                                  # (2,)  -> SMEM
    fcwt = fc_w.T.astype(jnp.float32)                                   # (16, 8): rows in flatten order
    fcb = fc_b.reshape(1, -1).astype(jnp.float32)                       # (1, 8)

    return pl.pallas_call(
        _fused_forward_kernel,
        out_shape=jax.ShapeDtypeStruct((N_BATCH, N_CLS), jnp.float32),
        in_specs=[
            pl.BlockSpec((C_IN * H_IN * N_BATCH, W_IN), lambda: (0, 0)),
            pl.BlockSpec(memory_space=pltpu.MemorySpace.SMEM),
            pl.BlockSpec(memory_space=pltpu.MemorySpace.SMEM),
            pl.BlockSpec((N_FEAT, N_CLS), lambda: (0, 0)),
            pl.BlockSpec((1, N_CLS), lambda: (0, 0)),
        ],
        out_specs=pl.BlockSpec((N_BATCH, N_CLS), lambda: (0, 0)),
        # grid=() on purpose: at N=2 the ~0.35us/step grid overhead would dominate.
        # For realistic batch sizes, add a batch grid axis with
        # dimension_semantics=("parallel",) so v7x's second TensorCore gets work.
    )(x2d, convw_flat, convb, fcwt, fcb)


def reference_forward(x, params):
    """Pure-JAX reference matching the PyTorch module (for correctness check)."""
    conv_w, conv_b, fc_w, fc_b = params
    y = jax.lax.conv_general_dilated(
        x, conv_w, window_strides=(1, 1), padding="VALID",
        dimension_numbers=("NCHW", "OIHW", "NCHW"),
        precision=jax.lax.Precision.HIGHEST)
    y = jnp.maximum(y + conv_b[None, :, None, None], 0.0)
    flat = y.reshape(y.shape[0], -1)
    out = jnp.dot(flat, fc_w.T, precision=jax.lax.Precision.HIGHEST) + fc_b[None, :]
    return jnp.maximum(out, 0.0)


def init_params(key):
    k1, k2, k3, k4 = jax.random.split(key, 4)
    conv_w = jax.random.normal(k1, (C_OUT, C_IN, KH, KW), jnp.float32) * 0.1
    conv_b = jax.random.normal(k2, (C_OUT,), jnp.float32) * 0.1
    fc_w = jax.random.normal(k3, (N_CLS, N_FEAT), jnp.float32) * 0.1
    fc_b = jax.random.normal(k4, (N_CLS,), jnp.float32) * 0.1
    return conv_w, conv_b, fc_w, fc_b


if __name__ == "__main__":
    key = jax.random.PRNGKey(0)
    kx, kp = jax.random.split(key)
    # Input (N, C, H, W) = (2, 3, 4, 6) so the flattened conv output has 16 features.
    x = jax.random.normal(kx, (N_BATCH, C_IN, H_IN, W_IN), jnp.float32)
    params = init_params(kp)

    out = jax.jit(model_forward)(x, params)
    out = jax.block_until_ready(out)
    assert out.shape == (N_BATCH, N_CLS), out.shape

    ref = jax.block_until_ready(reference_forward(x, params))
    assert jnp.allclose(out, ref, atol=1e-4, rtol=1e-4), (out, ref)

    print("KERNEL_OK")
</pallas_src>

<mosaic_0001>
module attributes {stable_mosaic.version = 11 : i64} {
  func.func @_fused_forward_kernel(%arg0: memref<24x6xf32, #tpu.memory_space<vmem>>, %arg1: memref<54xf32, #tpu.memory_space<smem>>, %arg2: memref<2xf32, #tpu.memory_space<smem>>, %arg3: memref<16x8xf32, #tpu.memory_space<vmem>>, %arg4: memref<1x8xf32, #tpu.memory_space<vmem>>, %arg5: memref<2x8xf32, #tpu.memory_space<vmem>>) attributes {dimension_semantics = [], scalar_prefetch = 0 : i64, scratch_operands = 0 : i64, tpu.core_type = #tpu.core_type<tc>} {
    %c0 = arith.constant 0 : index
    %0 = memref.load %arg1[%c0] : memref<54xf32, #tpu.memory_space<smem>>
    %c1 = arith.constant 1 : index
    %1 = memref.load %arg1[%c1] : memref<54xf32, #tpu.memory_space<smem>>
    %c2 = arith.constant 2 : index
    %2 = memref.load %arg1[%c2] : memref<54xf32, #tpu.memory_space<smem>>
    %c3 = arith.constant 3 : index
    %3 = memref.load %arg1[%c3] : memref<54xf32, #tpu.memory_space<smem>>
    %c4 = arith.constant 4 : index
    %4 = memref.load %arg1[%c4] : memref<54xf32, #tpu.memory_space<smem>>
    %c5 = arith.constant 5 : index
    %5 = memref.load %arg1[%c5] : memref<54xf32, #tpu.memory_space<smem>>
    %c6 = arith.constant 6 : index
    %6 = memref.load %arg1[%c6] : memref<54xf32, #tpu.memory_space<smem>>
    %c7 = arith.constant 7 : index
    %7 = memref.load %arg1[%c7] : memref<54xf32, #tpu.memory_space<smem>>
    %c8 = arith.constant 8 : index
    %8 = memref.load %arg1[%c8] : memref<54xf32, #tpu.memory_space<smem>>
    %c9 = arith.constant 9 : index
    %9 = memref.load %arg1[%c9] : memref<54xf32, #tpu.memory_space<smem>>
    %c10 = arith.constant 10 : index
    %10 = memref.load %arg1[%c10] : memref<54xf32, #tpu.memory_space<smem>>
    %c11 = arith.constant 11 : index
    %11 = memref.load %arg1[%c11] : memref<54xf32, #tpu.memory_space<smem>>
    %c12 = arith.constant 12 : index
    %12 = memref.load %arg1[%c12] : memref<54xf32, #tpu.memory_space<smem>>
    %c13 = arith.constant 13 : index
    %13 = memref.load %arg1[%c13] : memref<54xf32, #tpu.memory_space<smem>>
    %c14 = arith.constant 14 : index
    %14 = memref.load %arg1[%c14] : memref<54xf32, #tpu.memory_space<smem>>
    %c15 = arith.constant 15 : index
    %15 = memref.load %arg1[%c15] : memref<54xf32, #tpu.memory_space<smem>>
    %c16 = arith.constant 16 : index
    %16 = memref.load %arg1[%c16] : memref<54xf32, #tpu.memory_space<smem>>
    %c17 = arith.constant 17 : index
    %17 = memref.load %arg1[%c17] : memref<54xf32, #tpu.memory_space<smem>>
    %c18 = arith.constant 18 : index
    %18 = memref.load %arg1[%c18] : memref<54xf32, #tpu.memory_space<smem>>
    %c19 = arith.constant 19 : index
    %19 = memref.load %arg1[%c19] : memref<54xf32, #tpu.memory_space<smem>>
    %c20 = arith.constant 20 : index
    %20 = memref.load %arg1[%c20] : memref<54xf32, #tpu.memory_space<smem>>
    %c21 = arith.constant 21 : index
    %21 = memref.load %arg1[%c21] : memref<54xf32, #tpu.memory_space<smem>>
    %c22 = arith.constant 22 : index
    %22 = memref.load %arg1[%c22] : memref<54xf32, #tpu.memory_space<smem>>
    %c23 = arith.constant 23 : index
    %23 = memref.load %arg1[%c23] : memref<54xf32, #tpu.memory_space<smem>>
    %c24 = arith.constant 24 : index
    %24 = memref.load %arg1[%c24] : memref<54xf32, #tpu.memory_space<smem>>
    %c25 = arith.constant 25 : index
    %25 = memref.load %arg1[%c25] : memref<54xf32, #tpu.memory_space<smem>>
    %c26 = arith.constant 26 : index
    %26 = memref.load %arg1[%c26] : memref<54xf32, #tpu.memory_space<smem>>
    %c27 = arith.constant 27 : index
    %27 = memref.load %arg1[%c27] : memref<54xf32, #tpu.memory_space<smem>>
    %c28 = arith.constant 28 : index
    %28 = memref.load %arg1[%c28] : memref<54xf32, #tpu.memory_space<smem>>
    %c29 = arith.constant 29 : index
    %29 = memref.load %arg1[%c29] : memref<54xf32, #tpu.memory_space<smem>>
    %c30 = arith.constant 30 : index
    %30 = memref.load %arg1[%c30] : memref<54xf32, #tpu.memory_space<smem>>
    %c31 = arith.constant 31 : index
    %31 = memref.load %arg1[%c31] : memref<54xf32, #tpu.memory_space<smem>>
    %c32 = arith.constant 32 : index
    %32 = memref.load %arg1[%c32] : memref<54xf32, #tpu.memory_space<smem>>
    %c33 = arith.constant 33 : index
    %33 = memref.load %arg1[%c33] : memref<54xf32, #tpu.memory_space<smem>>
    %c34 = arith.constant 34 : index
    %34 = memref.load %arg1[%c34] : memref<54xf32, #tpu.memory_space<smem>>
    %c35 = arith.constant 35 : index
    %35 = memref.load %arg1[%c35] : memref<54xf32, #tpu.memory_space<smem>>
    %c36 = arith.constant 36 : index
    %36 = memref.load %arg1[%c36] : memref<54xf32, #tpu.memory_space<smem>>
    %c37 = arith.constant 37 : index
    %37 = memref.load %arg1[%c37] : memref<54xf32, #tpu.memory_space<smem>>
    %c38 = arith.constant 38 : index
    %38 = memref.load %arg1[%c38] : memref<54xf32, #tpu.memory_space<smem>>
    %c39 = arith.constant 39 : index
    %39 = memref.load %arg1[%c39] : memref<54xf32, #tpu.memory_space<smem>>
    %c40 = arith.constant 40 : index
    %40 = memref.load %arg1[%c40] : memref<54xf32, #tpu.memory_space<smem>>
    %c41 = arith.constant 41 : index
    %41 = memref.load %arg1[%c41] : memref<54xf32, #tpu.memory_space<smem>>
    %c42 = arith.constant 42 : index
    %42 = memref.load %arg1[%c42] : memref<54xf32, #tpu.memory_space<smem>>
    %c43 = arith.constant 43 : index
    %43 = memref.load %arg1[%c43] : memref<54xf32, #tpu.memory_space<smem>>
    %c44 = arith.constant 44 : index
    %44 = memref.load %arg1[%c44] : memref<54xf32, #tpu.memory_space<smem>>
    %c45 = arith.constant 45 : index
    %45 = memref.load %arg1[%c45] : memref<54xf32, #tpu.memory_space<smem>>
    %c46 = arith.constant 46 : index
    %46 = memref.load %arg1[%c46] : memref<54xf32, #tpu.memory_space<smem>>
    %c47 = arith.constant 47 : index
    %47 = memref.load %arg1[%c47] : memref<54xf32, #tpu.memory_space<smem>>
    %c48 = arith.constant 48 : index
    %48 = memref.load %arg1[%c48] : memref<54xf32, #tpu.memory_space<smem>>
    %c49 = arith.constant 49 : index
    %49 = memref.load %arg1[%c49] : memref<54xf32, #tpu.memory_space<smem>>
    %c50 = arith.constant 50 : index
    %50 = memref.load %arg1[%c50] : memref<54xf32, #tpu.memory_space<smem>>
    %c51 = arith.constant 51 : index
    %51 = memref.load %arg1[%c51] : memref<54xf32, #tpu.memory_space<smem>>
    %c52 = arith.constant 52 : index
    %52 = memref.load %arg1[%c52] : memref<54xf32, #tpu.memory_space<smem>>
    %c53 = arith.constant 53 : index
    %53 = memref.load %arg1[%c53] : memref<54xf32, #tpu.memory_space<smem>>
    %c0_0 = arith.constant 0 : index
    %54 = memref.load %arg2[%c0_0] : memref<2xf32, #tpu.memory_space<smem>>
    %c1_1 = arith.constant 1 : index
    %55 = memref.load %arg2[%c1_1] : memref<2xf32, #tpu.memory_space<smem>>
    %cst = arith.constant 0.000000e+00 : f32
    %56 = vector.broadcast %cst : f32 to vector<4x4xf32>
    %cst_2 = arith.constant 0.000000e+00 : f32
    %57 = vector.broadcast %cst_2 : f32 to vector<4x4xf32>
    %cst_3 = arith.constant 0.000000e+00 : f32
    %58 = vector.broadcast %cst_3 : f32 to vector<4x4xf32>
    %cst_4 = arith.constant 0.000000e+00 : f32
    %59 = vector.broadcast %cst_4 : f32 to vector<4x4xf32>
    %cst_5 = arith.constant 0.000000e+00 : f32
    %60 = vector.broadcast %cst_5 : f32 to vector<4x4xf32>
    %cst_6 = arith.constant 0.000000e+00 : f32
    %61 = vector.broadcast %cst_6 : f32 to vector<4x4xf32>
    %c0_7 = arith.constant 0 : index
    %c0_8 = arith.constant 0 : index
    %62 = vector.load %arg0[%c0_7, %c0_8] : memref<24x6xf32, #tpu.memory_space<vmem>>, vector<4x4xf32>
    %63 = vector.broadcast %0 : f32 to vector<4x4xf32>
    %64 = arith.mulf %63, %62 : vector<4x4xf32>
    %65 = arith.addf %56, %64 : vector<4x4xf32>
    %66 = vector.broadcast %27 : f32 to vector<4x4xf32>
    %67 = arith.mulf %66, %62 : vector<4x4xf32>
    %68 = arith.addf %59, %67 : vector<4x4xf32>
    %c0_9 = arith.constant 0 : index
    %c1_10 = arith.constant 1 : index
    %69 = vector.load %arg0[%c0_9, %c1_10] : memref<24x6xf32, #tpu.memory_space<vmem>>, vector<4x4xf32>
    %70 = vector.broadcast %1 : f32 to vector<4x4xf32>
    %71 = arith.mulf %70, %69 : vector<4x4xf32>
    %72 = arith.addf %65, %71 : vector<4x4xf32>
    %73 = vector.broadcast %28 : f32 to vector<4x4xf32>
    %74 = arith.mulf %73, %69 : vector<4x4xf32>
    %75 = arith.addf %68, %74 : vector<4x4xf32>
    %c0_11 = arith.constant 0 : index
    %c2_12 = arith.constant 2 : index
    %76 = vector.load %arg0[%c0_11, %c2_12] : memref<24x6xf32, #tpu.memory_space<vmem>>, vector<4x4xf32>
    %77 = vector.broadcast %2 : f32 to vector<4x4xf32>
    %78 = arith.mulf %77, %76 : vector<4x4xf32>
    %79 = arith.addf %72, %78 : vector<4x4xf32>
    %80 = vector.broadcast %29 : f32 to vector<4x4xf32>
    %81 = arith.mulf %80, %76 : vector<4x4xf32>
    %82 = arith.addf %75, %81 : vector<4x4xf32>
    %c2_13 = arith.constant 2 : index
    %c0_14 = arith.constant 0 : index
    %83 = vector.load %arg0[%c2_13, %c0_14] : memref<24x6xf32, #tpu.memory_space<vmem>>, vector<4x4xf32>
    %84 = vector.broadcast %3 : f32 to vector<4x4xf32>
    %85 = arith.mulf %84, %83 : vector<4x4xf32>
    %86 = arith.addf %79, %85 : vector<4x4xf32>
    %87 = vector.broadcast %30 : f32 to vector<4x4xf32>
    %88 = arith.mulf %87, %83 : vector<4x4xf32>
    %89 = arith.addf %82, %88 : vector<4x4xf32>
    %c2_15 = arith.constant 2 : index
    %c1_16 = arith.constant 1 : index
    %90 = vector.load %arg0[%c2_15, %c1_16] : memref<24x6xf32, #tpu.memory_space<vmem>>, vector<4x4xf32>
    %91 = vector.broadcast %4 : f32 to vector<4x4xf32>
    %92 = arith.mulf %91, %90 : vector<4x4xf32>
    %93 = arith.addf %86, %92 : vector<4x4xf32>
    %94 = vector.broadcast %31 : f32 to vector<4x4xf32>
    %95 = arith.mulf %94, %90 : vector<4x4xf32>
    %96 = arith.addf %89, %95 : vector<4x4xf32>
    %c2_17 = arith.constant 2 : index
    %c2_18 = arith.constant 2 : index
    %97 = vector.load %arg0[%c2_17, %c2_18] : memref<24x6xf32, #tpu.memory_space<vmem>>, vector<4x4xf32>
    %98 = vector.broadcast %5 : f32 to vector<4x4xf32>
    %99 = arith.mulf %98, %97 : vector<4x4xf32>
    %100 = arith.addf %93, %99 : vector<4x4xf32>
    %101 = vector.broadcast %32 : f32 to vector<4x4xf32>
    %102 = arith.mulf %101, %97 : vector<4x4xf32>
    %103 = arith.addf %96, %102 : vector<4x4xf32>
    %c4_19 = arith.constant 4 : index
    %c0_20 = arith.constant 0 : index
    %104 = vector.load %arg0[%c4_19, %c0_20] : memref<24x6xf32, #tpu.memory_space<vmem>>, vector<4x4xf32>
    %105 = vector.broadcast %6 : f32 to vector<4x4xf32>
    %106 = arith.mulf %105, %104 : vector<4x4xf32>
    %107 = arith.addf %100, %106 : vector<4x4xf32>
    %108 = vector.broadcast %33 : f32 to vector<4x4xf32>
    %109 = arith.mulf %108, %104 : vector<4x4xf32>
    %110 = arith.addf %103, %109 : vector<4x4xf32>
    %c4_21 = arith.constant 4 : index
    %c1_22 = arith.constant 1 : index
    %111 = vector.load %arg0[%c4_21, %c1_22] : memref<24x6xf32, #tpu.memory_space<vmem>>, vector<4x4xf32>
    %112 = vector.broadcast %7 : f32 to vector<4x4xf32>
    %113 = arith.mulf %112, %111 : vector<4x4xf32>
    %114 = arith.addf %107, %113 : vector<4x4xf32>
    %115 = vector.broadcast %34 : f32 to vector<4x4xf32>
    %116 = arith.mulf %115, %111 : vector<4x4xf32>
    %117 = arith.addf %110, %116 : vector<4x4xf32>
    %c4_23 = arith.constant 4 : index
    %c2_24 = arith.constant 2 : index
    %118 = vector.load %arg0[%c4_23, %c2_24] : memref<24x6xf32, #tpu.memory_space<vmem>>, vector<4x4xf32>
    %119 = vector.broadcast %8 : f32 to vector<4x4xf32>
    %120 = arith.mulf %119, %118 : vector<4x4xf32>
    %121 = arith.addf %114, %120 : vector<4x4xf32>
    %122 = vector.broadcast %35 : f32 to vector<4x4xf32>
    %123 = arith.mulf %122, %118 : vector<4x4xf32>
    %124 = arith.addf %117, %123 : vector<4x4xf32>
    %c8_25 = arith.constant 8 : index
    %c0_26 = arith.constant 0 : index
    %125 = vector.load %arg0[%c8_25, %c0_26] : memref<24x6xf32, #tpu.memory_space<vmem>>, vector<4x4xf32>
    %126 = vector.broadcast %9 : f32 to vector<4x4xf32>
    %127 = arith.mulf %126, %125 : vector<4x4xf32>
    %128 = arith.addf %57, %127 : vector<4x4xf32>
    %129 = vector.broadcast %36 : f32 to vector<4x4xf32>
    %130 = arith.mulf %129, %125 : vector<4x4xf32>
    %131 = arith.addf %60, %130 : vector<4x4xf32>
    %c8_27 = arith.constant 8 : index
    %c1_28 = arith.constant 1 : index
    %132 = vector.load %arg0[%c8_27, %c1_28] : memref<24x6xf32, #tpu.memory_space<vmem>>, vector<4x4xf32>
    %133 = vector.broadcast %10 : f32 to vector<4x4xf32>
    %134 = arith.mulf %133, %132 : vector<4x4xf32>
    %135 = arith.addf %128, %134 : vector<4x4xf32>
    %136 = vector.broadcast %37 : f32 to vector<4x4xf32>
    %137 = arith.mulf %136, %132 : vector<4x4xf32>
    %138 = arith.addf %131, %137 : vector<4x4xf32>
    %c8_29 = arith.constant 8 : index
    %c2_30 = arith.constant 2 : index
    %139 = vector.load %arg0[%c8_29, %c2_30] : memref<24x6xf32, #tpu.memory_space<vmem>>, vector<4x4xf32>
    %140 = vector.broadcast %11 : f32 to vector<4x4xf32>
    %141 = arith.mulf %140, %139 : vector<4x4xf32>
    %142 = arith.addf %135, %141 : vector<4x4xf32>
    %143 = vector.broadcast %38 : f32 to vector<4x4xf32>
    %144 = arith.mulf %143, %139 : vector<4x4xf32>
    %145 = arith.addf %138, %144 : vector<4x4xf32>
    %c10_31 = arith.constant 10 : index
    %c0_32 = arith.constant 0 : index
    %146 = vector.load %arg0[%c10_31, %c0_32] : memref<24x6xf32, #tpu.memory_space<vmem>>, vector<4x4xf32>
    %147 = vector.broadcast %12 : f32 to vector<4x4xf32>
    %148 = arith.mulf %147, %146 : vector<4x4xf32>
    %149 = arith.addf %142, %148 : vector<4x4xf32>
    %150 = vector.broadcast %39 : f32 to vector<4x4xf32>
    %151 = arith.mulf %150, %146 : vector<4x4xf32>
    %152 = arith.addf %145, %151 : vector<4x4xf32>
    %c10_33 = arith.constant 10 : index
    %c1_34 = arith.constant 1 : index
    %153 = vector.load %arg0[%c10_33, %c1_34] : memref<24x6xf32, #tpu.memory_space<vmem>>, vector<4x4xf32>
    %154 = vector.broadcast %13 : f32 to vector<4x4xf32>
    %155 = arith.mulf %154, %153 : vector<4x4xf32>
    %156 = arith.addf %149, %155 : vector<4x4xf32>
    %157 = vector.broadcast %40 : f32 to vector<4x4xf32>
    %158 = arith.mulf %157, %153 : vector<4x4xf32>
    %159 = arith.addf %152, %158 : vector<4x4xf32>
    %c10_35 = arith.constant 10 : index
    %c2_36 = arith.constant 2 : index
    %160 = vector.load %arg0[%c10_35, %c2_36] : memref<24x6xf32, #tpu.memory_space<vmem>>, vector<4x4xf32>
    %161 = vector.broadcast %14 : f32 to vector<4x4xf32>
    %162 = arith.mulf %161, %160 : vector<4x4xf32>
    %163 = arith.addf %156, %162 : vector<4x4xf32>
    %164 = vector.broadcast %41 : f32 to vector<4x4xf32>
    %165 = arith.mulf %164, %160 : vector<4x4xf32>
    %166 = arith.addf %159, %165 : vector<4x4xf32>
    %c12_37 = arith.constant 12 : index
    %c0_38 = arith.constant 0 : index
    %167 = vector.load %arg0[%c12_37, %c0_38] : memref<24x6xf32, #tpu.memory_space<vmem>>, vector<4x4xf32>
    %168 = vector.broadcast %15 : f32 to vector<4x4xf32>
    %169 = arith.mulf %168, %167 : vector<4x4xf32>
    %170 = arith.addf %163, %169 : vector<4x4xf32>
    %171 = vector.broadcast %42 : f32 to vector<4x4xf32>
    %172 = arith.mulf %171, %167 : vector<4x4xf32>
    %173 = arith.addf %166, %172 : vector<4x4xf32>
    %c12_39 = arith.constant 12 : index
    %c1_40 = arith.constant 1 : index
    %174 = vector.load %arg0[%c12_39, %c1_40] : memref<24x6xf32, #tpu.memory_space<vmem>>, vector<4x4xf32>
    %175 = vector.broadcast %16 : f32 to vector<4x4xf32>
    %176 = arith.mulf %175, %174 : vector<4x4xf32>
    %177 = arith.addf %170, %176 : vector<4x4xf32>
    %178 = vector.broadcast %43 : f32 to vector<4x4xf32>
    %179 = arith.mulf %178, %174 : vector<4x4xf32>
    %180 = arith.addf %173, %179 : vector<4x4xf32>
    %c12_41 = arith.constant 12 : index
    %c2_42 = arith.constant 2 : index
    %181 = vector.load %arg0[%c12_41, %c2_42] : memref<24x6xf32, #tpu.memory_space<vmem>>, vector<4x4xf32>
    %182 = vector.broadcast %17 : f32 to vector<4x4xf32>
    %183 = arith.mulf %182, %181 : vector<4x4xf32>
    %184 = arith.addf %177, %183 : vector<4x4xf32>
    %185 = vector.broadcast %44 : f32 to vector<4x4xf32>
    %186 = arith.mulf %185, %181 : vector<4x4xf32>
    %187 = arith.addf %180, %186 : vector<4x4xf32>
    %c16_43 = arith.constant 16 : index
    %c0_44 = arith.constant 0 : index
    %188 = vector.load %arg0[%c16_43, %c0_44] : memref<24x6xf32, #tpu.memory_space<vmem>>, vector<4x4xf32>
    %189 = vector.broadcast %18 : f32 to vector<4x4xf32>
    %190 = arith.mulf %189, %188 : vector<4x4xf32>
    %191 = arith.addf %58, %190 : vector<4x4xf32>
    %192 = vector.broadcast %45 : f32 to vector<4x4xf32>
    %193 = arith.mulf %192, %188 : vector<4x4xf32>
    %194 = arith.addf %61, %193 : vector<4x4xf32>
    %c16_45 = arith.constant 16 : index
    %c1_46 = arith.constant 1 : index
    %195 = vector.load %arg0[%c16_45, %c1_46] : memref<24x6xf32, #tpu.memory_space<vmem>>, vector<4x4xf32>
    %196 = vector.broadcast %19 : f32 to vector<4x4xf32>
    %197 = arith.mulf %196, %195 : vector<4x4xf32>
    %198 = arith.addf %191, %197 : vector<4x4xf32>
    %199 = vector.broadcast %46 : f32 to vector<4x4xf32>
    %200 = arith.mulf %199, %195 : vector<4x4xf32>
    %201 = arith.addf %194, %200 : vector<4x4xf32>
    %c16_47 = arith.constant 16 : index
    %c2_48 = arith.constant 2 : index
    %202 = vector.load %arg0[%c16_47, %c2_48] : memref<24x6xf32, #tpu.memory_space<vmem>>, vector<4x4xf32>
    %203 = vector.broadcast %20 : f32 to vector<4x4xf32>
    %204 = arith.mulf %203, %202 : vector<4x4xf32>
    %205 = arith.addf %198, %204 : vector<4x4xf32>
    %206 = vector.broadcast %47 : f32 to vector<4x4xf32>
    %207 = arith.mulf %206, %202 : vector<4x4xf32>
    %208 = arith.addf %201, %207 : vector<4x4xf32>
    %c18_49 = arith.constant 18 : index
    %c0_50 = arith.constant 0 : index
    %209 = vector.load %arg0[%c18_49, %c0_50] : memref<24x6xf32, #tpu.memory_space<vmem>>, vector<4x4xf32>
    %210 = vector.broadcast %21 : f32 to vector<4x4xf32>
    %211 = arith.mulf %210, %209 : vector<4x4xf32>
    %212 = arith.addf %205, %211 : vector<4x4xf32>
    %213 = vector.broadcast %48 : f32 to vector<4x4xf32>
    %214 = arith.mulf %213, %209 : vector<4x4xf32>
    %215 = arith.addf %208, %214 : vector<4x4xf32>
    %c18_51 = arith.constant 18 : index
    %c1_52 = arith.constant 1 : index
    %216 = vector.load %arg0[%c18_51, %c1_52] : memref<24x6xf32, #tpu.memory_space<vmem>>, vector<4x4xf32>
    %217 = vector.broadcast %22 : f32 to vector<4x4xf32>
    %218 = arith.mulf %217, %216 : vector<4x4xf32>
    %219 = arith.addf %212, %218 : vector<4x4xf32>
    %220 = vector.broadcast %49 : f32 to vector<4x4xf32>
    %221 = arith.mulf %220, %216 : vector<4x4xf32>
    %222 = arith.addf %215, %221 : vector<4x4xf32>
    %c18_53 = arith.constant 18 : index
    %c2_54 = arith.constant 2 : index
    %223 = vector.load %arg0[%c18_53, %c2_54] : memref<24x6xf32, #tpu.memory_space<vmem>>, vector<4x4xf32>
    %224 = vector.broadcast %23 : f32 to vector<4x4xf32>
    %225 = arith.mulf %224, %223 : vector<4x4xf32>
    %226 = arith.addf %219, %225 : vector<4x4xf32>
    %227 = vector.broadcast %50 : f32 to vector<4x4xf32>
    %228 = arith.mulf %227, %223 : vector<4x4xf32>
    %229 = arith.addf %222, %228 : vector<4x4xf32>
    %c20_55 = arith.constant 20 : index
    %c0_56 = arith.constant 0 : index
    %230 = vector.load %arg0[%c20_55, %c0_56] : memref<24x6xf32, #tpu.memory_space<vmem>>, vector<4x4xf32>
    %231 = vector.broadcast %24 : f32 to vector<4x4xf32>
    %232 = arith.mulf %231, %230 : vector<4x4xf32>
    %233 = arith.addf %226, %232 : vector<4x4xf32>
    %234 = vector.broadcast %51 : f32 to vector<4x4xf32>
    %235 = arith.mulf %234, %230 : vector<4x4xf32>
    %236 = arith.addf %229, %235 : vector<4x4xf32>
    %c20_57 = arith.constant 20 : index
    %c1_58 = arith.constant 1 : index
    %237 = vector.load %arg0[%c20_57, %c1_58] : memref<24x6xf32, #tpu.memory_space<vmem>>, vector<4x4xf32>
    %238 = vector.broadcast %25 : f32 to vector<4x4xf32>
    %239 = arith.mulf %238, %237 : vector<4x4xf32>
    %240 = arith.addf %233, %239 : vector<4x4xf32>
    %241 = vector.broadcast %52 : f32 to vector<4x4xf32>
    %242 = arith.mulf %241, %237 : vector<4x4xf32>
    %243 = arith.addf %236, %242 : vector<4x4xf32>
    %c20_59 = arith.constant 20 : index
    %c2_60 = arith.constant 2 : index
    %244 = vector.load %arg0[%c20_59, %c2_60] : memref<24x6xf32, #tpu.memory_space<vmem>>, vector<4x4xf32>
    %245 = vector.broadcast %26 : f32 to vector<4x4xf32>
    %246 = arith.mulf %245, %244 : vector<4x4xf32>
    %247 = arith.addf %240, %246 : vector<4x4xf32>
    %248 = vector.broadcast %53 : f32 to vector<4x4xf32>
    %249 = arith.mulf %248, %244 : vector<4x4xf32>
    %250 = arith.addf %243, %249 : vector<4x4xf32>
    %251 = arith.addf %121, %184 : vector<4x4xf32>
    %252 = arith.addf %251, %247 : vector<4x4xf32>
    %253 = vector.broadcast %54 : f32 to vector<4x4xf32>
    %254 = arith.addf %252, %253 : vector<4x4xf32>
    %cst_61 = arith.constant 0.000000e+00 : f32
    %255 = vector.broadcast %cst_61 : f32 to vector<4x4xf32>
    %256 = arith.maximumf %254, %255 : vector<4x4xf32>
    %257 = arith.addf %124, %187 : vector<4x4xf32>
    %258 = arith.addf %257, %250 : vector<4x4xf32>
    %259 = vector.broadcast %55 : f32 to vector<4x4xf32>
    %260 = arith.addf %258, %259 : vector<4x4xf32>
    %cst_62 = arith.constant 0.000000e+00 : f32
    %261 = vector.broadcast %cst_62 : f32 to vector<4x4xf32>
    %262 = arith.maximumf %260, %261 : vector<4x4xf32>
    %263 = vector.extract_strided_slice %256 {offsets = [0, 0], sizes = [2, 4], strides = [1, 1]} : vector<4x4xf32> to vector<2x4xf32>
    %264 = vector.extract_strided_slice %256 {offsets = [2, 0], sizes = [2, 4], strides = [1, 1]} : vector<4x4xf32> to vector<2x4xf32>
    %265 = vector.extract_strided_slice %262 {offsets = [0, 0], sizes = [2, 4], strides = [1, 1]} : vector<4x4xf32> to vector<2x4xf32>
    %266 = vector.extract_strided_slice %262 {offsets = [2, 0], sizes = [2, 4], strides = [1, 1]} : vector<4x4xf32> to vector<2x4xf32>
    %267 = tpu.concatenate %263, %264, %265, %266 in 1 : vector<2x4xf32>, vector<2x4xf32>, vector<2x4xf32>, vector<2x4xf32> -> vector<2x16xf32>
    %c0_63 = arith.constant 0 : index
    %c0_64 = arith.constant 0 : index
    %268 = vector.load %arg3[%c0_63, %c0_64] : memref<16x8xf32, #tpu.memory_space<vmem>>, vector<16x8xf32>
    %cst_65 = arith.constant dense<0.000000e+00> : vector<2x8xf32>
    %269 = tpu.matmul %267, %268, %cst_65 {dimension_numbers = #tpu.dot_dimension_numbers<[1], [0], [0], [1], [0, 0, 1, 1], [], []>} : vector<2x16xf32>, vector<16x8xf32>, vector<2x8xf32> -> vector<2x8xf32>
    %c0_66 = arith.constant 0 : index
    %c0_67 = arith.constant 0 : index
    %270 = vector.load %arg4[%c0_66, %c0_67] : memref<1x8xf32, #tpu.memory_space<vmem>>, vector<1x8xf32>
    %271 = vector.broadcast %270 : vector<1x8xf32> to vector<2x8xf32>
    %272 = arith.addf %269, %271 : vector<2x8xf32>
    %cst_68 = arith.constant 0.000000e+00 : f32
    %273 = vector.broadcast %cst_68 : f32 to vector<2x8xf32>
    %274 = arith.maximumf %272, %273 : vector<2x8xf32>
    %c0_69 = arith.constant 0 : index
    %c0_70 = arith.constant 0 : index
    %275 = vector.load %arg5[%c0_69, %c0_70] : memref<2x8xf32, #tpu.memory_space<vmem>>, vector<2x8xf32>
    tpu.vector_store %arg5[%c0_69, %c0_70], %274 {strides = array<i32>} : memref<2x8xf32, #tpu.memory_space<vmem>>, vector<2x8xf32>,
    return
  }
}

</mosaic_0001>

<bundles_post_ra>
// kernel: model_forward.1
= control target key start
LH: loop header
LB: loop body
LE: loop exit
PB: predicated region body
PF: predicated region fallthrough
CT: control target
= control target key end

     0   :  { %10 = vsyncpa [#allocation4], 0  ;;  %s887_s0 = inlined_call_operand.vmem [shape: f32[24,6], index: 0, kind: input, shape index: {}]   ;;  %s888_s1 = inlined_call_operand.vmem [shape: f32[54], index: 1, kind: input, shape index: {}]   ;;  %s889_s2 = inlined_call_operand.vmem [shape: f32[2], index: 2, kind: input, shape index: {}]   ;;  %s890_s3 = inlined_call_operand.vmem [shape: f32[16,8], index: 3, kind: input, shape index: {}]   ;;  %s891_s4 = inlined_call_operand.vmem [shape: f32[1,8], index: 4, kind: input, shape index: {}]   ;;  %s892_s5 = inlined_call_operand.hbm [shape: f32[2,8], index: 5, kind: output, shape index: {}]  }
   0x1   :  { %11 = vsyncpa [#allocation6], 0 }
   0x2   :  { %12 = vsyncpa [#allocation3], 0  ;;  %s20_s20 = sshll.u32 %s888_s1, 4  ;;  %s29_s23 = sshll.u32 %s889_s2, 4  ;;  %s21_s20 = int_to_ptr.vmem [resolvable:$true] %s20_s20  ;;  %s30_s23 = int_to_ptr.vmem [resolvable:$true] %s29_s23 }
   0x3   :  { %s615_s24 = smov [#allocation2]   ;;  %s616_s25 = smov [#allocation5]  }
   0x4   :  { %23 = dma.vmem_to_smem %s21_s20, 16, %s615_s24, [#allocation4]  }
   0x5   :  { %32 = dma.vmem_to_smem %s30_s23, 16, %s616_s25, [#allocation6]  }
   0x6   :  { %609 = dma.done.wait [#allocation4], 16  }
   0x7   :  { %610 = vsyncadd [#allocation4], 4294967280 }
   0x8   :  { %611 = dma.done.wait [#allocation6], 16  }
   0x9   :  { %612 = vsyncadd [#allocation6], 4294967280 }
   0xa   :  { %45 = sfence }
   0xb   :  { %s524_s26 = sld [smem:[#allocation2 + $0x1c]]  ;;  %v662_v0 = vld [vmem:[%s887_s0] sm:$0xf]  ;;  %s617_s7 = smov 127   ;;  %v671_v6 = vld [vmem:[%s887_s0 + $0x8] sm:$0xf] }
   0xc   :  { %s497_s27 = sld [smem:[#allocation2 + $0x1]]  ;;  %s618_s13 = smov 126   ;;  %v683_v15 = vld [vmem:[%s887_s0 + $0x10] sm:$0xf]  ;;  %v697_v25 = vld [vmem:[%s887_s0 + $0x2] sm:$0xf] }
   0xd   :  { %s498_s28 = sld [smem:[#allocation2 + $0x2]]  ;;  %v705_v29 = vld [vmem:[%s887_s0 + $0xa] sm:$0xf]  ;;  %v722_v42 = vld [vmem:[%s887_s0 + $0x12] sm:$0xf]  ;;  %vm440_vm0 = vcmask 31744  }
   0xe   :  { %s506_s29 = sld [smem:[#allocation2 + $0xa]]  ;;  %v736_v52 = vld [vmem:[%s887_s0 + $0x4] sm:$0xf]  ;;  %v744_v56 = vld [vmem:[%s887_s0 + $0xc] sm:$0xf]  ;;  %vm442_vm1 = vcmask 64512  }
   0xf   :  { %s533_s2 = sld [smem:[#allocation2 + $0x25]]  ;;  %vm444_vm2 = vcmask 97280   ;;  %vm452_vm3 = vcmask 130048   ;;  %vm477_vm4 = vcmask 58368  }
  0x10   :  { %s507_s6 = sld [smem:[#allocation2 + $0xb]] }
  0x11   :  { %v116_v1 = vstv %s524_s26  ;;  %s525_s10 = sld [smem:[#allocation2 + $0x1d]] }
  0x12   :  { %v117_v2 = vmul.f32 %v116_v1, %v662_v0  ;;  %v109_v3 = vstv %s497_s27  ;;  %s515_s11 = sld [smem:[#allocation2 + $0x13]] }
  0x13   :  { %v110_v4 = vmul.f32 %v109_v3, %v662_v0  ;;  %v123_v5 = vstv %s498_s28  ;;  %s534_s12 = sld [smem:[#allocation2 + $0x26]] }
  0x14   :  { %119 = vrot.lane.b32.xlu1 %v117_v2, %s617_s7  ;;  %v214_v8 = vstv %s506_s29  ;;  %v124_v10 = vmul.f32 %v123_v5, %v662_v0  ;;  %s516_s14 = sld [smem:[#allocation2 + $0x14]] }
  0x15   :  { %112 = vrot.lane.b32.xlu0 %v110_v4, %s617_s7  ;;  %v221_v7 = vstv %s533_s2  ;;  %v215_v11 = vmul.f32 %v214_v8, %v671_v6  ;;  %s542_s17 = sld [smem:[#allocation2 + $0x2e]] }
  0x16   :  { %v222_v9 = vmul.f32 %v221_v7, %v671_v6  ;;  %v228_v12 = vstv %s507_s6  ;;  %s500_s18 = sld [smem:[#allocation2 + $0x4]]  ;;  %v761_v7 = vld [vmem:[%s887_s0 + $0x14] sm:$0xf] }
  0x17   :  { %v229_v13 = vmul.f32 %v228_v12, %v671_v6  ;;  %v130_v14 = vstv %s525_s10  ;;  %s543_s19 = sld [smem:[#allocation2 + $0x2f]] }
  0x18   :  { %224 = vrot.lane.b32.xlu2 %v222_v9, %s617_s7  ;;  %v319_v16 = vstv %s515_s11  ;;  %v131_v17 = vmul.f32 %v130_v14, %v662_v0  ;;  %s509_s20 = sld [smem:[#allocation2 + $0xd]] }
  0x19   :  { %v320_v18 = vmul.f32 %v319_v16, %v683_v15  ;;  %v235_v19 = vstv %s534_s12  ;;  %s527_s23 = sld [smem:[#allocation2 + $0x1f]] }
  0x1a   :  { %v236_v20 = vmul.f32 %v235_v19, %v671_v6  ;;  %v333_v21 = vstv %s516_s14  ;;  %s536_s24 = sld [smem:[#allocation2 + $0x28]] }
  0x1b   :  { %v326_v22 = vstv %s542_s17  ;;  %v334_v23 = vmul.f32 %v333_v21, %v683_v15  ;;  %s501_s27 = sld [smem:[#allocation2 + $0x5]] }
  0x1c   :  { %126 = vrot.lane.b32.xlu1 %v124_v10, %s618_s13  ;;  %v327_v24 = vmul.f32 %v326_v22, %v683_v15  ;;  %v144_v26 = vstv %s500_s18  ;;  %s510_s28 = sld [smem:[#allocation2 + $0xe]] }
  0x1d   :  { %217 = vrot.lane.b32.xlu0 %v215_v11, %s617_s7  ;;  %v145_v27 = vmul.f32 %v144_v26, %v697_v25  ;;  %v340_v28 = vstv %s543_s19  ;;  %s528_s29 = sld [smem:[#allocation2 + $0x20]] }
  0x1e   :  { %v249_v30 = vstv %s509_s20  ;;  %v341_v31 = vmul.f32 %v340_v28, %v683_v15  ;;  %s518_s1 = sld [smem:[#allocation2 + $0x16]] }
  0x1f   :  { %v250_v32 = vmul.f32 %v249_v30, %v705_v29  ;;  %v151_v33 = vstv %s527_s23  ;;  %s537_s30 = sld [smem:[#allocation2 + $0x29]] }
  0x20   :  { %231 = vrot.lane.b32.xlu2 %v229_v13, %s618_s13  ;;  %v152_v34 = vmul.f32 %v151_v33, %v697_v25  ;;  %v256_v35 = vstv %s536_s24  ;;  %s519_s2 = sld [smem:[#allocation2 + $0x17]] }
  0x21   :  { %v158_v36 = vstv %s501_s27  ;;  %v257_v37 = vmul.f32 %v256_v35, %v705_v29  ;;  %s545_s9 = sld [smem:[#allocation2 + $0x31]] }
  0x22   :  { %v159_v38 = vmul.f32 %v158_v36, %v697_v25  ;;  %v263_v39 = vstv %s510_s28  ;;  %s503_s10 = sld [smem:[#allocation2 + $0x7]] }
  0x23   :  { %v264_v40 = vmul.f32 %v263_v39, %v705_v29  ;;  %v165_v41 = vstv %s528_s29  ;;  %s546_s11 = sld [smem:[#allocation2 + $0x32]] }
  0x24   :  { %133 = vrot.lane.b32.xlu1 %v131_v17, %s618_s13  ;;  %v354_v43 = vstv %s518_s1  ;;  %v166_v44 = vmul.f32 %v165_v41, %v697_v25  ;;  %s512_s12 = sld [smem:[#allocation2 + $0x10]] }
  0x25   :  { %322 = vrot.lane.b32.xlu0 %v320_v18, %s617_s7  ;;  %v355_v45 = vmul.f32 %v354_v43, %v722_v42  ;;  %v270_v46 = vstv %s537_s30  ;;  %s530_s16 = sld [smem:[#allocation2 + $0x22]] }
  0x26   :  { %v271_v47 = vmul.f32 %v270_v46, %v705_v29  ;;  %v368_v48 = vstv %s519_s2  ;;  %s539_s17 = sld [smem:[#allocation2 + $0x2b]] }
  0x27   :  { %v361_v49 = vstv %s545_s9  ;;  %v369_v50 = vmul.f32 %v368_v48, %v722_v42  ;;  %s504_s20 = sld [smem:[#allocation2 + $0x8]] }
  0x28   :  { %238 = vrot.lane.b32.xlu2 %v236_v20, %s618_s13  ;;  %v362_v51 = vmul.f32 %v361_v49, %v722_v42  ;;  %v179_v53 = vstv %s503_s10  ;;  %s513_s21 = sld [smem:[#allocation2 + $0x11]] }
  0x29   :  { %v180_v54 = vmul.f32 %v179_v53, %v736_v52  ;;  %v375_v55 = vstv %s546_s11  ;;  %s531_s22 = sld [smem:[#allocation2 + $0x23]] }
  0x2a   :  { %v284_v57 = vstv %s512_s12  ;;  %v376_v58 = vmul.f32 %v375_v55, %v722_v42  ;;  %s521_s23 = sld [smem:[#allocation2 + $0x19]] }
  0x2b   :  { %v285_v59 = vmul.f32 %v284_v57, %v744_v56  ;;  %v186_v60 = vstv %s530_s16  ;;  %s540_s24 = sld [smem:[#allocation2 + $0x2c]] }
  0x2c   :  { %336 = vrot.lane.b32.xlu1 %v334_v23, %s618_s13  ;;  %v187_v61 = vmul.f32 %v186_v60, %v736_v52  ;;  %v291_v62 = vstv %s539_s17  ;;  %s522_s25 = sld [smem:[#allocation2 + $0x1a]] }
  0x2d   :  { %329 = vrot.lane.b32.xlu0 %v327_v24, %s617_s7  ;;  %v193_v63 = vstv %s504_s20  ;;  %v292_v1 = vmul.f32 %v291_v62, %v744_v56  ;;  %s548_s28 = sld [smem:[#allocation2 + $0x34]] }
  0x2e   :  { %v194_v2 = vmul.f32 %v193_v63, %v736_v52  ;;  %v298_v3 = vstv %s513_s21  ;;  %s549_s29 = sld [smem:[#allocation2 + $0x35]] }
  0x2f   :  { %v299_v4 = vmul.f32 %v298_v3, %v744_v56  ;;  %v200_v5 = vstv %s531_s22  ;;  %s46_s0 = sld [smem:[#allocation2]]  ;;  %s619_s22 = smov 4  }
  0x30   :  { %147 = vrot.lane.b32.xlu2 %v145_v27, %s617_s7  ;;  %v389_v8 = vstv %s521_s23  ;;  %v201_v9 = vmul.f32 %v200_v5, %v736_v52  ;;  %s505_s1 = sld [smem:[#allocation2 + $0x9]]  ;;  %s620_s23 = smov 8  }
  0x31   :  { %v390_v10 = vmul.f32 %v389_v8, %v761_v7  ;;  %v305_v11 = vstv %s540_s24  ;;  %s526_s30 = sld [smem:[#allocation2 + $0x1e]]  ;;  %s621_s24 = smov 12  }
  0x32   :  { %v306_v12 = vmul.f32 %v305_v11, %v744_v56  ;;  %v403_v13 = vstv %s522_s25  ;;  %s535_s2 = sld [smem:[#allocation2 + $0x27]] }
  0x33   :  { %v396_v14 = vstv %s548_s28  ;;  %v404_v16 = vmul.f32 %v403_v13, %v761_v7  ;;  %s499_s6 = sld [smem:[#allocation2 + $0x3]] }
  0x34   :  { %343 = vrot.lane.b32.xlu1 %v341_v31, %s618_s13  ;;  %v397_v17 = vmul.f32 %v396_v14, %v761_v7  ;;  %v410_v18 = vstv %s549_s29  ;;  %s805_s8 = sld [smem:[#allocation2 + $0xc]] }
  0x35   :  { %252 = vrot.lane.b32.xlu0 %v250_v32, %s617_s7  ;;  %v411_v19 = vmul.f32 %v410_v18, %v761_v7  ;;  %v103_v23 = vstv %s46_s0  ;;  %s807_s9 = sld [smem:[#allocation2 + $0x12]] }
  0x36   :  { %v104_v27 = vmul.f32 %v103_v23, %v662_v0  ;;  %s814_s10 = sld [smem:[#allocation2 + $0x2d]] }
  0x37   :  { %v141_v60 = vstv %s526_s30  ;;  %s816_s11 = sld [smem:[#allocation2 + $0x2a]]  ;;  %s486_s30 = sshll.u32 %s892_s5, 4  ;;  %s487_s30 = int_to_ptr.hbm [resolvable:$true] %s486_s30 }
  0x38   :  { %154 = vrot.lane.b32.xlu2 %v152_v34, %s617_s7  ;;  %s818_s12 = sld [smem:[#allocation2 + $0x21]] }
  0x39   :  { %s822_s14 = sld [smem:[#allocation2 + $0x15]] }
  0x3a   :  { %v243_v5 = vstv %s805_s8  ;;  %s825_s15 = sld [smem:[#allocation2 + $0x6]] }
  0x3b   :  { %v313_v8 = vstv %s807_s9  ;;  %s828_s16 = sld [smem:[#allocation2 + $0x30]] }
  0x3c   :  { %259 = vrot.lane.b32.xlu1 %v257_v37, %s617_s7  ;;  %s833_s17 = sld [smem:[#allocation2 + $0xf]]  ;;  %v316_v18 = vstv %s814_s10 }
  0x3d   :  { %161 = vrot.lane.b32.xlu0 %v159_v38, %s618_s13  ;;  %s843_s18 = sld [smem:[#allocation2 + $0x18]] }
  0x3e   :  { %s853_s19 = sld [smem:[#allocation2 + $0x33]] }
  0x3f   :  { %s100_s20 = sld [smem:[#allocation5]] }
  0x40   :  { %266 = vrot.lane.b32.xlu2 %v264_v40, %s618_s13  ;;  %s550_s21 = sld [smem:[#allocation5 + $0x1]] }
  0x44   :  { %168 = vrot.lane.b32.xlu1 %v166_v44, %s618_s13 }
  0x45   :  { %357 = vrot.lane.b32.xlu0 %v355_v45, %s617_s7 }
  0x48   :  { %273 = vrot.lane.b32.xlu2 %v271_v47, %s618_s13 }
  0x4c   :  { %371 = vrot.lane.b32.xlu1 %v369_v50, %s618_s13 }
  0x4d   :  { %364 = vrot.lane.b32.xlu0 %v362_v51, %s617_s7 }
  0x50   :  { %182 = vrot.lane.b32.xlu2 %v180_v54, %s617_s7  ;;  %v208_v54 = vstv %s505_s1 }
  0x54   :  { %378 = vrot.lane.b32.xlu1 %v376_v58, %s618_s13 }
  0x55   :  { %287 = vrot.lane.b32.xlu0 %v285_v59, %s617_s7  ;;  %v209_v59 = vmul.f32 %v208_v54, %v671_v6 }
  0x58   :  { %189 = vrot.lane.b32.xlu2 %v187_v61, %s617_s7  ;;  %v246_v61 = vstv %s535_s2 }
  0x59   :  { %v247_v3 = vmul.f32 %v246_v61, %v705_v29 }
  0x5c   :  { %294 = vrot.lane.b32.xlu1 %v292_v1, %s617_s7 }
  0x5d   :  { %196 = vrot.lane.b32.xlu0 %v194_v2, %s618_s13  ;;  %v142_v2 = vmul.f32 %v141_v60, %v697_v25 }
  0x60   :  { %301 = vrot.lane.b32.xlu2 %v299_v4, %s618_s13  ;;  %v138_v4 = vstv %s499_s6 }
  0x64   :  { %203 = vrot.lane.b32.xlu1 %v201_v9, %s618_s13 }
  0x65   :  { %392 = vrot.lane.b32.xlu0 %v390_v10, %s617_s7  ;;  %v139_v10 = vmul.f32 %v138_v4, %v697_v25  ;;  %v386_v4 = vstv %s853_s19 }
  0x68   :  { %308 = vrot.lane.b32.xlu2 %v306_v12, %s618_s13 }
  0x6c   :  { %406 = vrot.lane.b32.xlu1 %v404_v16, %s618_s13  ;;  %v244_v16 = vmul.f32 %v243_v5, %v705_v29 }
  0x6d   :  { %399 = vrot.lane.b32.xlu0 %v397_v17, %s617_s7  ;;  %s532_s7 = sld [smem:[#allocation2 + $0x24]]  ;;  %v314_v17 = vmul.f32 %v313_v8, %v683_v15 }
  0x70   :  { %413 = vrot.lane.b32.xlu2 %v411_v19, %s618_s13  ;;  %s523_s13 = sld [smem:[#allocation2 + $0x1b]] }
  0x72   :  { %v225_v20 = vpop.permute.xlu2 %224 }
  0x73   :  { %v211_v48 = vstv %s532_s7  ;;  %s622_s7 = smov [#allocation7]  }
  0x74   :  { %v212_v51 = vmul.f32 %v211_v48, %v671_v6 }
  0x76   :  { %v106_v50 = vstv %s523_s13  ;;  %v227_v57 = vadd.f32 %v225_v20, %v212_v51  ;;  %v281_v20 = vstv %s816_s11 }
  0x77   :  { %v107_v53 = vmul.f32 %v106_v50, %v662_v0  ;;  %v282_v29 = vmul.f32 %v281_v20, %v744_v56 }
  0x7a   :  { %v776_v21 = vpop.permute.xlu2 %231 }
  0x82   :  { %v239_v24 = vpop.permute.xlu2 %238 }
  0x83   :  { %v241_v63 = vadd.f32 %v239_v24, %v227_v57 }
  0x85   :  { %v248_v12 = vadd.f32 %v247_v3, %v241_v63  ;;  %v383_v63 = vstv %s843_s18 }
  0x86   :  { %v120_v22 = vpop.permute.xlu1 %119 }
  0x87   :  { %v113_v26 = vpop.permute.xlu0 %112  ;;  %v122_v62 = vadd.f32 %v120_v22, %v107_v53  ;;  %v176_v22 = vstv %s818_s12 }
  0x88   :  { %v115_v28 = vadd.f32 %v113_v26, %v104_v27  ;;  %v348_v26 = vstv %s822_s14 }
  0x8a   :  { %v781_v33 = vpop.permute.xlu2 %147 }
  0x8e   :  { %v127_v30 = vpop.permute.xlu1 %126 }
  0x8f   :  { %v779_v31 = vadd.f32 %v127_v30, %v115_v28  ;;  %v218_v32 = vpop.permute.xlu0 %217 }
  0x90   :  { %v220_v6 = vadd.f32 %v218_v32, %v209_v59 }
  0x91   :  { %v140_v25 = vadd.f32 %v139_v10, %v779_v31  ;;  %v349_v31 = vmul.f32 %v348_v26, %v722_v42 }
  0x92   :  { %v155_v36 = vpop.permute.xlu2 %154  ;;  %v234_v14 = vadd.f32 %v776_v21, %v220_v6  ;;  %v317_v21 = vmul.f32 %v316_v18, %v683_v15  ;;  %v384_v6 = vmul.f32 %v383_v63, %v761_v7 }
  0x93   :  { %v150_v50 = vadd.f32 %v781_v33, %v140_v25 }
  0x94   :  { %v245_v27 = vadd.f32 %v244_v16, %v234_v14 }
  0x96   :  { %v134_v34 = vpop.permute.xlu1 %133 }
  0x97   :  { %v783_v35 = vpop.permute.xlu0 %322  ;;  %v136_v1 = vadd.f32 %v134_v34, %v122_v62  ;;  %v177_v34 = vmul.f32 %v176_v22, %v736_v52 }
  0x98   :  { %v325_v28 = vadd.f32 %v783_v35, %v314_v17  ;;  %v278_v35 = vstv %s833_s17 }
  0x99   :  { %v143_v11 = vadd.f32 %v142_v2, %v136_v1  ;;  %v279_v61 = vmul.f32 %v278_v35, %v744_v56 }
  0x9a   :  { %v789_v39 = vpop.permute.xlu2 %266 }
  0x9b   :  { %v157_v24 = vadd.f32 %v155_v36, %v143_v11  ;;  %v351_v36 = vstv %s828_s16 }
  0x9c   :  { %v352_v33 = vmul.f32 %v351_v36, %v722_v42 }
  0x9e   :  { %v785_v37 = vpop.permute.xlu1 %336 }
  0x9f   :  { %v787_v38 = vpop.permute.xlu0 %329  ;;  %v339_v15 = vadd.f32 %v785_v37, %v325_v28 }
  0xa2   :  { %v795_v43 = vpop.permute.xlu2 %273 }
  0xa6   :  { %v791_v40 = vpop.permute.xlu1 %343 }
  0xa7   :  { %v793_v41 = vpop.permute.xlu0 %252 }
  0xa8   :  { %v255_v51 = vadd.f32 %v793_v41, %v245_v27  ;;  %v350_v41 = vadd.f32 %v349_v31, %v339_v15  ;;  %v424_v27 = vstv %s550_s21 }
  0xaa   :  { %v801_v49 = vpop.permute.xlu2 %182  ;;  %v269_v37 = vadd.f32 %v789_v39, %v255_v51  ;;  %v560_v51 = vld [vmem:[%s891_s4] ss:$0 sm:$0xff] }
  0xac   :  { %v280_v42 = vadd.f32 %v279_v61, %v269_v37 }
  0xae   :  { %v260_v44 = vpop.permute.xlu1 %259 }
  0xaf   :  { %v797_v45 = vpop.permute.xlu0 %161  ;;  %v262_v19 = vadd.f32 %v260_v44, %v248_v12  ;;  %v173_v44 = vstv %s825_s15 }
  0xb0   :  { %v174_v54 = vmul.f32 %v173_v44, %v736_v52 }
  0xb1   :  { %v276_v30 = vadd.f32 %v795_v43, %v262_v19  ;;  %v332_v43 = vadd.f32 %v787_v38, %v317_v21 }
  0xb2   :  { %v190_v0 = vpop.permute.xlu2 %189 }
  0xb3   :  { %v283_v59 = vadd.f32 %v282_v29, %v276_v30  ;;  %v346_v60 = vadd.f32 %v791_v40, %v332_v43 }
  0xb5   :  { %v353_v52 = vadd.f32 %v352_v33, %v346_v60 }
  0xb6   :  { %v169_v46 = vpop.permute.xlu1 %168 }
  0xb7   :  { %v799_v47 = vpop.permute.xlu0 %357  ;;  %v171_v32 = vadd.f32 %v169_v46, %v157_v24  ;;  %v164_v46 = vadd.f32 %v797_v45, %v150_v50  ;;  %v419_v24 = vstv %s100_s20 }
  0xb8   :  { %v360_v45 = vadd.f32 %v799_v47, %v350_v41 }
  0xb9   :  { %v178_v57 = vadd.f32 %v177_v34, %v171_v32  ;;  %v175_v38 = vadd.f32 %v174_v54, %v164_v46  ;;  %v447_v32 = vld [vmem:[%s890_s3 + $0x8] sm:$0xff]  ;;  %v446_v34 = vld [vmem:[%s890_s3] sm:$0xff]  ;;  %s484_s3 = sshll.u32 %s622_s7, 4  ;;  %s485_s3 = int_to_ptr.vmem [resolvable:$true] %s484_s3 }
  0xba   :  { %v302_v23 = vpop.permute.xlu2 %301  ;;  %470 = vmatpush.msra.mxu0 %v447_v32 }
  0xbb   :  { %v192_v2 = vadd.f32 %v190_v0, %v178_v57  ;;  %v185_v10 = vadd.f32 %v801_v49, %v175_v38  ;;  %v387_v0 = vmul.f32 %v386_v4, %v761_v7 }
  0xbc   :  { %471 = vmatpush.msra.mxu0 %v446_v34 }
  0xbe   :  { %v809_v55 = vpop.permute.xlu1 %371 }
  0xbf   :  { %v811_v58 = vpop.permute.xlu0 %364  ;;  %v374_v40 = vadd.f32 %v809_v55, %v360_v45 }
  0xc0   :  { %v367_v39 = vadd.f32 %v811_v58, %v353_v52 }
  0xc1   :  { %v385_v16 = vadd.f32 %v384_v6, %v374_v40 }
  0xc2   :  { %v309_v1 = vpop.permute.xlu2 %308 }
  0xc6   :  { %v830_v9 = vpop.permute.xlu1 %378 }
  0xc7   :  { %v288_v13 = vpop.permute.xlu0 %287  ;;  %v381_v47 = vadd.f32 %v830_v9, %v367_v39 }
  0xc8   :  { %v290_v11 = vadd.f32 %v288_v13, %v280_v42 }
  0xc9   :  { %v388_v19 = vadd.f32 %v387_v0, %v381_v47 }
  0xca   :  { %v304_v17 = vadd.f32 %v302_v23, %v290_v11  ;;  %v414_v58 = vpop.permute.xlu2 %413 }
  0xce   :  { %v295_v48 = vpop.permute.xlu1 %294 }
  0xcf   :  { %v197_v53 = vpop.permute.xlu0 %196  ;;  %v297_v62 = vadd.f32 %v295_v48, %v283_v59 }
  0xd0   :  { %v199_v14 = vadd.f32 %v197_v53, %v185_v10 }
  0xd1   :  { %v311_v5 = vadd.f32 %v309_v1, %v297_v62 }
  0xd2   :  { %v417_v20 = vadd.f32 %v304_v17, %v199_v14 }
  0xd6   :  { %v204_v3 = vpop.permute.xlu1 %203 }
  0xd7   :  { %v206_v56 = vadd.f32 %v204_v3, %v192_v2  ;;  %v393_v8 = vpop.permute.xlu0 %392 }
  0xd8   :  { %v395_v55 = vadd.f32 %v393_v8, %v385_v16 }
  0xd9   :  { %v422_v12 = vadd.f32 %v311_v5, %v206_v56 }
  0xde   :  { %v407_v18 = vpop.permute.xlu1 %406 }
  0xdf   :  { %v409_v22 = vadd.f32 %v407_v18, %v395_v55  ;;  %v400_v25 = vpop.permute.xlu0 %399 }
  0xe0   :  { %v402_v26 = vadd.f32 %v400_v25, %v388_v19 }
  0xe1   :  { %v418_v49 = vadd.f32 %v417_v20, %v409_v22 }
  0xe2   :  { %v416_v13 = vadd.f32 %v414_v58, %v402_v26 }
  0xe3   :  { %v420_v21 = vadd.f32 %v419_v24, %v418_v49 }
  0xe4   :  { %v423_v9 = vadd.f32 %v422_v12, %v416_v13 }
  0xe5   :  { %v421_v29 = vmax.f32 %v420_v21, 0.0 }
  0xe6   :  { %v425_v7 = vadd.f32 %v424_v27, %v423_v9 }
  0xe7   :  { %v428_v28 = vrot.slane %v421_v29, 2 }
  0xe8   :  { %v426_v30 = vmax.f32 %v425_v7, 0.0 }
  0xe9   :  { %429 = vrot.lane.b32.xlu0 %v428_v28, %s619_s22 }
  0xea   :  { %433 = vrot.lane.b32.xlu1 %v426_v30, %s620_s23  ;;  %v436_v23 = vrot.slane %v426_v30, 2 }
  0xec   :  { %437 = vrot.lane.b32.xlu2 %v436_v23, %s621_s24 }
 0x146   :  { %v438_v48 = vpop.permute.xlu2 %437 }
 0x15b   :  { %v430_v44 = vpop.permute.xlu0 %429 }
 0x15c   :  { %v434_v31 = vpop.permute.xlu1 %433  ;;  %v441_v36 = vsel %vm440_vm0, %v421_v29, %v430_v44 }
 0x15d   :  { %v443_v50 = vsel %vm442_vm1, %v441_v36, %v434_v31 }
 0x15e   :  { %v445_v15 = vsel %vm444_vm2, %v443_v50, %v438_v48 }
 0x15f   :  { %551 = vmatmul.msk.f32.vlgmr.msra.gmra.mxu0 %vm452_vm3, %v445_v15 }
 0x1dc   :  { %v473_v35 = vpop.f32.mrf.mxu0 }
 0x1dd   :  { %v474_v53 = vadd.f32 %v560_v51, %v473_v35 }
 0x1df   :  { %v476_v43 = vmax.f32 %v474_v53, 0.0 }
 0x1e1   :  { %478 = vst.msk [vmem:[#allocation7] sm:$0x3] %vm477_vm4, %v476_v43 }
 0x1e2   :  { %489 = dma.vmem_to_hbm [thread:$0]  %s485_s3, 32, %s487_s30, [#allocation3]  }
 0x1e3   :  { %613 = dma.done.wait [#allocation3], 32  }
 0x1e4   :  { %614 = vsyncadd [#allocation3], 4294967264 }
 0x1e5   :  { %494 = vsyncpa [#allocation3], 1 }
 0x1e6   :  { %495 = vsyncpa [#allocation4], 1 }
 0x1e7   :  { %496 = vsyncpa [#allocation6], 1 }

</bundles_post_ra>
